<compile_context>
chip_gen: v7x
topology: tpu7x:2x2x1
jax: 0.10.0
libtpu: 0.0.40
codegen_flags: <defaults>
</compile_context>

<pallas_src>
import functools

import jax
import jax.numpy as jnp
from jax.experimental import pallas as pl
from jax.experimental.pallas import tpu as pltpu  # noqa: F401  (TPU backend)


# ---------------------------------------------------------------------------
# Fused Pallas kernel: all GCN layers + LayerNorm + mean pool in one launch.
# ---------------------------------------------------------------------------
def _fused_graph_encoder_kernel(*refs, num_layers, contract_adj_first, apply_relu):
    # refs = (x, adj, w0, s0, w1, s1, ..., ln_gamma, ln_beta, node_out, graph_out)
    x_ref, adj_ref = refs[0], refs[1]
    layer_refs = refs[2:2 + 2 * num_layers]
    ln_g_ref = refs[2 + 2 * num_layers]
    ln_b_ref = refs[3 + 2 * num_layers]
    node_ref, graph_ref = refs[-2], refs[-1]

    adj_bf = adj_ref[...]                      # already bf16; resident in VMEM once
    h = x_ref[...]                             # f32 activations

    for i in range(num_layers):
        w_ref = layer_refs[2 * i]              # [in_dim, out_dim], BN folded in
        s_ref = layer_refs[2 * i + 1]          # [1, out_dim], bias (+BN shift) folded in
        h_bf = h.astype(jnp.bfloat16)
        w_bf = w_ref[...].astype(jnp.bfloat16)
        if contract_adj_first[i]:
            # (Ahat @ X) @ W'  -- contract the N x N matmul through the narrower in_dim
            ax = jnp.dot(adj_bf, h_bf, preferred_element_type=jnp.float32)
            y = jnp.dot(ax.astype(jnp.bfloat16), w_bf,
                        preferred_element_type=jnp.float32)
        else:
            # Ahat @ (X @ W')
            xw = jnp.dot(h_bf, w_bf, preferred_element_type=jnp.float32)
            y = jnp.dot(adj_bf, xw.astype(jnp.bfloat16),
                        preferred_element_type=jnp.float32)
        y = y + s_ref[...]                     # f32 epilogue (bias + folded eval-BN)
        if apply_relu[i]:
            y = jnp.maximum(y, 0.0)
        # TODO(synk): F.dropout is identity in eval mode; training-mode dropout not implemented.
        h = y

    # LayerNorm over the feature dim (f32 math; biased variance matches nn.LayerNorm).
    mu = jnp.mean(h, axis=-1, keepdims=True)
    var = jnp.mean((h - mu) ** 2, axis=-1, keepdims=True)
    xn = (h - mu) * jax.lax.rsqrt(var + 1e-5)
    node = xn * ln_g_ref[...] + ln_b_ref[...]
    node_ref[...] = node.astype(node_ref.dtype)

    # global_mean_pool with batch == all zeros (single graph) -> mean over nodes.
    inv_n = 1.0 / node.shape[0]
    graph_ref[...] = (jnp.sum(node, axis=0, keepdims=True) * inv_n).astype(graph_ref.dtype)


def _full_block(arr):
    assert arr.ndim == 2
    return pl.BlockSpec(arr.shape, lambda: (0, 0))


def graph_encoder_forward(x, adj_bf16, folded_params, ln_params):
    """Single fused pallas_call for the whole GraphEncoder forward (eval mode)."""
    num_layers = len(folded_params)
    n = x.shape[0]
    out_dim = folded_params[-1][0].shape[1]

    # Static per-layer decisions (shape-driven, resolved at trace time).
    contract_adj_first = tuple(w.shape[0] < w.shape[1] for (w, _) in folded_params)
    apply_relu = tuple(i < num_layers - 1 for i in range(num_layers))

    kernel = functools.partial(
        _fused_graph_encoder_kernel,
        num_layers=num_layers,
        contract_adj_first=contract_adj_first,
        apply_relu=apply_relu,
    )

    ln_gamma, ln_beta = ln_params
    args = [x, adj_bf16]
    for w, s in folded_params:
        args += [w, s]
    args += [ln_gamma, ln_beta]

    node_emb, graph_emb = pl.pallas_call(
        kernel,
        out_shape=(
            jax.ShapeDtypeStruct((n, out_dim), jnp.float32),
            jax.ShapeDtypeStruct((1, out_dim), jnp.float32),
        ),
        in_specs=[_full_block(a) for a in args],
        out_specs=(
            pl.BlockSpec((n, out_dim), lambda: (0, 0)),
            pl.BlockSpec((1, out_dim), lambda: (0, 0)),
        ),
    )(*args)
    return node_emb, graph_emb


# ---------------------------------------------------------------------------
# Glue: parameter construction, BN/bias folding, graph densification (plain JAX)
# ---------------------------------------------------------------------------
def make_normalized_adjacency(edge_index, num_nodes):
    """Dense Ahat = D^-1/2 (A + I) D^-1/2, symmetric, with self loops (f32)."""
    src, dst = edge_index[0], edge_index[1]
    a = jnp.zeros((num_nodes, num_nodes), jnp.float32)
    a = a.at[dst, src].set(1.0)
    a = jnp.maximum(a, a.T)                                      # undirected
    a = jnp.maximum(a, jnp.eye(num_nodes, dtype=jnp.float32))    # self loops
    deg = jnp.sum(a, axis=1)
    d_inv_sqrt = jax.lax.rsqrt(deg)
    return d_inv_sqrt[:, None] * a * d_inv_sqrt[None, :]


def init_params(key, in_channels, hidden_channels, out_channels, num_layers):
    dims = [in_channels] + [hidden_channels] * (num_layers - 1) + [out_channels]
    params = []
    for i in range(num_layers):
        key, kw, kb = jax.random.split(key, 3)
        fan_in, fan_out = dims[i], dims[i + 1]
        limit = (6.0 / (fan_in + fan_out)) ** 0.5
        w_t = jax.random.uniform(kw, (fan_in, fan_out), jnp.float32, -limit, limit)
        b = jax.random.uniform(kb, (1, fan_out), jnp.float32, -0.1, 0.1)
        # BatchNorm1d at init, eval mode: running_mean=0, running_var=1, gamma=1, beta=0
        eps = 1e-5
        bn_scale = jnp.ones((1, fan_out), jnp.float32) / jnp.sqrt(1.0 + eps)
        bn_shift = jnp.zeros((1, fan_out), jnp.float32)
        params.append((w_t, b, bn_scale, bn_shift))
    # LayerNorm at init: weight=1, bias=0
    ln_gamma = jnp.ones((1, out_channels), jnp.float32)
    ln_beta = jnp.zeros((1, out_channels), jnp.float32)
    return params, (ln_gamma, ln_beta)


def fold_params(raw_params):
    """Fold eval-mode BatchNorm (and bias) into each layer's weight/shift.

    For layer i < last:  y = (Ahat X W^T + b) * scale + shift
                           = Ahat X (W^T * scale) + (b * scale + shift)
    Last layer: no BN, shift = bias.
    """
    num_layers = len(raw_params)
    folded = []
    for i, (w_t, b, bn_scale, bn_shift) in enumerate(raw_params):
        if i < num_layers - 1:
            w_f = w_t * bn_scale                    # column-scale [in, out] * [1, out]
            s_f = b * bn_scale + bn_shift
        else:
            w_f = w_t
            s_f = b
        folded.append((w_f, s_f))
    return folded


# ---------------------------------------------------------------------------
if __name__ == "__main__":
    key = jax.random.PRNGKey(0)

    # Small synthetic graph: 16 nodes, 40 random directed edges (symmetrized).
    num_nodes = 16
    num_edges = 40
    in_channels, hidden_channels, out_channels, num_layers = 8, 32, 16, 3

    key, kx, ke = jax.random.split(key, 3)
    x = jax.random.normal(kx, (num_nodes, in_channels), jnp.float32)
    edge_index = jax.random.randint(ke, (2, num_edges), 0, num_nodes, jnp.int32)

    adj = make_normalized_adjacency(edge_index, num_nodes)
    adj_bf16 = adj.astype(jnp.bfloat16)           # bf16 feed for the MXU, half the DMA bytes

    raw_params, ln_params = init_params(key, in_channels, hidden_channels,
                                        out_channels, num_layers)
    folded_params = fold_params(raw_params)       # one-time host-side BN/bias fold

    fwd = jax.jit(graph_encoder_forward)
    node_emb, graph_emb = fwd(x, adj_bf16, folded_params, ln_params)
    node_emb = jax.block_until_ready(node_emb)
    graph_emb = jax.block_until_ready(graph_emb)

    assert node_emb.shape == (num_nodes, out_channels)
    assert graph_emb.shape == (1, out_channels)
    assert bool(jnp.all(jnp.isfinite(node_emb))) and bool(jnp.all(jnp.isfinite(graph_emb)))
    print("KERNEL_OK")
</pallas_src>

<mosaic_0001>
module attributes {stable_mosaic.version = 11 : i64} {
  func.func @_fused_graph_encoder_kernel(%arg0: memref<16x8xf32, #tpu.memory_space<vmem>>, %arg1: memref<16x16xbf16, #tpu.memory_space<vmem>>, %arg2: memref<8x32xf32, #tpu.memory_space<vmem>>, %arg3: memref<1x32xf32, #tpu.memory_space<vmem>>, %arg4: memref<32x32xf32, #tpu.memory_space<vmem>>, %arg5: memref<1x32xf32, #tpu.memory_space<vmem>>, %arg6: memref<32x16xf32, #tpu.memory_space<vmem>>, %arg7: memref<1x16xf32, #tpu.memory_space<vmem>>, %arg8: memref<1x16xf32, #tpu.memory_space<vmem>>, %arg9: memref<1x16xf32, #tpu.memory_space<vmem>>, %arg10: memref<16x16xf32, #tpu.memory_space<vmem>>, %arg11: memref<1x16xf32, #tpu.memory_space<vmem>>) attributes {dimension_semantics = [], scalar_prefetch = 0 : i64, scratch_operands = 0 : i64, tpu.core_type = #tpu.core_type<tc>} {
    %c0 = arith.constant 0 : index
    %c0_0 = arith.constant 0 : index
    %0 = vector.load %arg1[%c0, %c0_0] : memref<16x16xbf16, #tpu.memory_space<vmem>>, vector<16x16xbf16>
    %c0_1 = arith.constant 0 : index
    %c0_2 = arith.constant 0 : index
    %1 = vector.load %arg0[%c0_1, %c0_2] : memref<16x8xf32, #tpu.memory_space<vmem>>, vector<16x8xf32>
    %2 = arith.truncf %1 : vector<16x8xf32> to vector<16x8xbf16>
    %c0_3 = arith.constant 0 : index
    %c0_4 = arith.constant 0 : index
    %3 = vector.load %arg2[%c0_3, %c0_4] : memref<8x32xf32, #tpu.memory_space<vmem>>, vector<8x32xf32>
    %4 = arith.truncf %3 : vector<8x32xf32> to vector<8x32xbf16>
    %cst = arith.constant dense<0.000000e+00> : vector<16x8xf32>
    %5 = tpu.matmul %0, %2, %cst {dimension_numbers = #tpu.dot_dimension_numbers<[1], [0], [0], [1], [0, 0, 1, 1], [], []>} : vector<16x16xbf16>, vector<16x8xbf16>, vector<16x8xf32> -> vector<16x8xf32>
    %6 = arith.truncf %5 : vector<16x8xf32> to vector<16x8xbf16>
    %cst_5 = arith.constant dense<0.000000e+00> : vector<16x32xf32>
    %7 = tpu.matmul %6, %4, %cst_5 {dimension_numbers = #tpu.dot_dimension_numbers<[1], [0], [0], [1], [0, 0, 1, 1], [], []>} : vector<16x8xbf16>, vector<8x32xbf16>, vector<16x32xf32> -> vector<16x32xf32>
    %c0_6 = arith.constant 0 : index
    %c0_7 = arith.constant 0 : index
    %8 = vector.load %arg3[%c0_6, %c0_7] : memref<1x32xf32, #tpu.memory_space<vmem>>, vector<1x32xf32>
    %9 = vector.broadcast %8 : vector<1x32xf32> to vector<16x32xf32>
    %10 = arith.addf %7, %9 : vector<16x32xf32>
    %cst_8 = arith.constant 0.000000e+00 : f32
    %11 = vector.broadcast %cst_8 : f32 to vector<16x32xf32>
    %12 = arith.maximumf %10, %11 : vector<16x32xf32>
    %13 = arith.truncf %12 : vector<16x32xf32> to vector<16x32xbf16>
    %c0_9 = arith.constant 0 : index
    %c0_10 = arith.constant 0 : index
    %14 = vector.load %arg4[%c0_9, %c0_10] : memref<32x32xf32, #tpu.memory_space<vmem>>, vector<32x32xf32>
    %15 = arith.truncf %14 : vector<32x32xf32> to vector<32x32xbf16>
    %cst_11 = arith.constant dense<0.000000e+00> : vector<16x32xf32>
    %16 = tpu.matmul %13, %15, %cst_11 {dimension_numbers = #tpu.dot_dimension_numbers<[1], [0], [0], [1], [0, 0, 1, 1], [], []>} : vector<16x32xbf16>, vector<32x32xbf16>, vector<16x32xf32> -> vector<16x32xf32>
    %17 = arith.truncf %16 : vector<16x32xf32> to vector<16x32xbf16>
    %cst_12 = arith.constant dense<0.000000e+00> : vector<16x32xf32>
    %18 = tpu.matmul %0, %17, %cst_12 {dimension_numbers = #tpu.dot_dimension_numbers<[1], [0], [0], [1], [0, 0, 1, 1], [], []>} : vector<16x16xbf16>, vector<16x32xbf16>, vector<16x32xf32> -> vector<16x32xf32>
    %c0_13 = arith.constant 0 : index
    %c0_14 = arith.constant 0 : index
    %19 = vector.load %arg5[%c0_13, %c0_14] : memref<1x32xf32, #tpu.memory_space<vmem>>, vector<1x32xf32>
    %20 = vector.broadcast %19 : vector<1x32xf32> to vector<16x32xf32>
    %21 = arith.addf %18, %20 : vector<16x32xf32>
    %cst_15 = arith.constant 0.000000e+00 : f32
    %22 = vector.broadcast %cst_15 : f32 to vector<16x32xf32>
    %23 = arith.maximumf %21, %22 : vector<16x32xf32>
    %24 = arith.truncf %23 : vector<16x32xf32> to vector<16x32xbf16>
    %c0_16 = arith.constant 0 : index
    %c0_17 = arith.constant 0 : index
    %25 = vector.load %arg6[%c0_16, %c0_17] : memref<32x16xf32, #tpu.memory_space<vmem>>, vector<32x16xf32>
    %26 = arith.truncf %25 : vector<32x16xf32> to vector<32x16xbf16>
    %cst_18 = arith.constant dense<0.000000e+00> : vector<16x16xf32>
    %27 = tpu.matmul %24, %26, %cst_18 {dimension_numbers = #tpu.dot_dimension_numbers<[1], [0], [0], [1], [0, 0, 1, 1], [], []>} : vector<16x32xbf16>, vector<32x16xbf16>, vector<16x16xf32> -> vector<16x16xf32>
    %28 = arith.truncf %27 : vector<16x16xf32> to vector<16x16xbf16>
    %cst_19 = arith.constant dense<0.000000e+00> : vector<16x16xf32>
    %29 = tpu.matmul %0, %28, %cst_19 {dimension_numbers = #tpu.dot_dimension_numbers<[1], [0], [0], [1], [0, 0, 1, 1], [], []>} : vector<16x16xbf16>, vector<16x16xbf16>, vector<16x16xf32> -> vector<16x16xf32>
    %c0_20 = arith.constant 0 : index
    %c0_21 = arith.constant 0 : index
    %30 = vector.load %arg7[%c0_20, %c0_21] : memref<1x16xf32, #tpu.memory_space<vmem>>, vector<1x16xf32>
    %31 = vector.broadcast %30 : vector<1x16xf32> to vector<16x16xf32>
    %32 = arith.addf %29, %31 : vector<16x16xf32>
    %cst_22 = arith.constant dense<0.000000e+00> : vector<16xf32>
    %33 = vector.multi_reduction <add>, %32, %cst_22 [1] : vector<16x16xf32> to vector<16xf32>
    %34 = vector.shape_cast %33 : vector<16xf32> to vector<16x1xf32>
    %cst_23 = arith.constant 1.600000e+01 : f32
    %35 = vector.broadcast %cst_23 : f32 to vector<16x1xf32>
    %36 = arith.divf %34, %35 : vector<16x1xf32>
    %37 = vector.broadcast %36 : vector<16x1xf32> to vector<16x16xf32>
    %38 = arith.subf %32, %37 : vector<16x16xf32>
    %39 = arith.mulf %38, %38 : vector<16x16xf32>
    %cst_24 = arith.constant dense<0.000000e+00> : vector<16xf32>
    %40 = vector.multi_reduction <add>, %39, %cst_24 [1] : vector<16x16xf32> to vector<16xf32>
    %41 = vector.shape_cast %40 : vector<16xf32> to vector<16x1xf32>
    %cst_25 = arith.constant 1.600000e+01 : f32
    %42 = vector.broadcast %cst_25 : f32 to vector<16x1xf32>
    %43 = arith.divf %41, %42 : vector<16x1xf32>
    %44 = vector.broadcast %36 : vector<16x1xf32> to vector<16x16xf32>
    %45 = arith.subf %32, %44 : vector<16x16xf32>
    %cst_26 = arith.constant 9.99999974E-6 : f32
    %46 = vector.broadcast %cst_26 : f32 to vector<16x1xf32>
    %47 = arith.addf %43, %46 : vector<16x1xf32>
    %48 = math.rsqrt %47 : vector<16x1xf32>
    %49 = vector.broadcast %48 : vector<16x1xf32> to vector<16x16xf32>
    %50 = arith.mulf %45, %49 : vector<16x16xf32>
    %c0_27 = arith.constant 0 : index
    %c0_28 = arith.constant 0 : index
    %51 = vector.load %arg8[%c0_27, %c0_28] : memref<1x16xf32, #tpu.memory_space<vmem>>, vector<1x16xf32>
    %52 = vector.broadcast %51 : vector<1x16xf32> to vector<16x16xf32>
    %53 = arith.mulf %50, %52 : vector<16x16xf32>
    %c0_29 = arith.constant 0 : index
    %c0_30 = arith.constant 0 : index
    %54 = vector.load %arg9[%c0_29, %c0_30] : memref<1x16xf32, #tpu.memory_space<vmem>>, vector<1x16xf32>
    %55 = vector.broadcast %54 : vector<1x16xf32> to vector<16x16xf32>
    %56 = arith.addf %53, %55 : vector<16x16xf32>
    %c0_31 = arith.constant 0 : index
    %c0_32 = arith.constant 0 : index
    %57 = vector.load %arg10[%c0_31, %c0_32] : memref<16x16xf32, #tpu.memory_space<vmem>>, vector<16x16xf32>
    tpu.vector_store %arg10[%c0_31, %c0_32], %56 {strides = array<i32>} : memref<16x16xf32, #tpu.memory_space<vmem>>, vector<16x16xf32>,
    %cst_33 = arith.constant dense<0.000000e+00> : vector<16xf32>
    %58 = vector.multi_reduction <add>, %56, %cst_33 [0] : vector<16x16xf32> to vector<16xf32>
    %59 = vector.shape_cast %58 : vector<16xf32> to vector<1x16xf32>
    %cst_34 = arith.constant 6.250000e-02 : f32
    %60 = vector.broadcast %cst_34 : f32 to vector<1x16xf32>
    %61 = arith.mulf %59, %60 : vector<1x16xf32>
    %c0_35 = arith.constant 0 : index
    %c0_36 = arith.constant 0 : index
    %62 = vector.load %arg11[%c0_35, %c0_36] : memref<1x16xf32, #tpu.memory_space<vmem>>, vector<1x16xf32>
    tpu.vector_store %arg11[%c0_35, %c0_36], %61 {strides = array<i32>} : memref<1x16xf32, #tpu.memory_space<vmem>>, vector<1x16xf32>,
    return
  }
}

</mosaic_0001>

<bundles_post_ra>
// kernel: graph_encoder_forward.1
= control target key start
LH: loop header
LB: loop body
LE: loop exit
PB: predicated region body
PF: predicated region fallthrough
CT: control target
= control target key end

     0   :  { %17 = vsyncpa [#allocation3], 0  ;;  %v573_v2 = vmov 0.0   ;;  %vm574_vm0 = vmmov 0   ;;  %s752_s0 = inlined_call_operand.vmem [shape: f32[16,8], index: 0, kind: input, shape index: {}]   ;;  %s753_s1 = inlined_call_operand.vmem [shape: bf16[16,16], index: 1, kind: input, shape index: {}]   ;;  %s754_s2 = inlined_call_operand.vmem [shape: f32[8,32], index: 2, kind: input, shape index: {}]   ;;  %s755_s3 = inlined_call_operand.vmem [shape: f32[1,32], index: 3, kind: input, shape index: {}]   ;;  %s756_s4 = inlined_call_operand.vmem [shape: f32[32,32], index: 4, kind: input, shape index: {}]   ;;  %s757_s5 = inlined_call_operand.vmem [shape: f32[1,32], index: 5, kind: input, shape index: {}]   ;;  %s758_s6 = inlined_call_operand.vmem [shape: f32[32,16], index: 6, kind: input, shape index: {}]   ;;  %s759_s7 = inlined_call_operand.vmem [shape: f32[1,16], index: 7, kind: input, shape index: {}]   ;;  %s760_s8 = inlined_call_operand.vmem [shape: f32[1,16], index: 8, kind: input, shape index: {}]   ;;  %s761_s9 = inlined_call_operand.vmem [shape: f32[1,16], index: 9, kind: input, shape index: {}]   ;;  %s762_s10 = inlined_call_operand.hbm [shape: f32[16,16], index: 10, kind: output, shape index: {0}]   ;;  %s763_s11 = inlined_call_operand.hbm [shape: f32[1,16], index: 11, kind: output, shape index: {1}]  }
   0x1   :  { %v42_v0 = vld [vmem:[%s752_s0] sm:$0xff]  ;;  %v43_v1 = vld [vmem:[%s752_s0 + $0x8] sm:$0xff]  ;;  %474 = vmatprep.subr.bf16.mxu0 %v573_v2  ;;  %476 = vmatprep.mubr.msk.bf16.mxu0 %vm574_vm0, %v573_v2 }
   0x2   :  { %v44_v3 = vpack.c.bf16 %v43_v1, %v42_v0 }
   0x3   :  { %18 = vsyncpa [#allocation5], 0  ;;  %v651_v4 = vld [vmem:[%s753_s1] sm:$0xff]   ;;  %480 = vmatprep.subr.bf16.mxu1 %v573_v2  ;;  %482 = vmatprep.mubr.msk.bf16.mxu1 %vm574_vm0, %v573_v2  ;;  %vm52_vm1 = vcmask 130048   ;;  %vm109_vm2 = vcmask 1043456   ;;  %vm105_vm3 = vcmask 64512  }
   0x4   :  { %475 = vmatpush3.bf16.msra.mxu0 %v44_v3  ;;  %v45_v5 = vld [vmem:[%s754_s2] sm:$0xff]  ;;  %v158_v14 = vld [vmem:[%s756_s4 + $0x8] sm:$0xff]  ;;  %v159_v16 = vld [vmem:[%s756_s4 + $0x10] sm:$0xff]  ;;  %vm163_vm4 = vcmask 261120   ;;  %s575_s23 = smov [#allocation2]  }
   0x5   :  { %486 = vmatprep.subr.bf16.mxu0 %v573_v2  ;;  %v46_v6 = vpack.c.bf16 %v45_v5, %v45_v5  ;;  %v157_v13 = vld [vmem:[%s756_s4] sm:$0xff]  ;;  %v160_v17 = vld [vmem:[%s756_s4 + $0x18] sm:$0xff]  ;;  %v261_v35 = vld [vmem:[%s758_s6 + $0x8] sm:$0xff]  ;;  %s423_s1 = sshll.u32 %s575_s23, 4  ;;  %s424_s1 = int_to_ptr.vmem [resolvable:$true] %s423_s1 }
   0x6   :  { %v161_v15 = vpack.c.bf16 %v158_v14, %v157_v13  ;;  %v162_v18 = vpack.c.bf16 %v160_v17, %v159_v16  ;;  %v450_v19 = vld [vmem:[%s755_s3] ss:$0 sm:$0xff]  ;;  %v262_v37 = vld [vmem:[%s758_s6 + $0x10] sm:$0xff]  ;;  %v263_v38 = vld [vmem:[%s758_s6 + $0x18] sm:$0xff]  ;;  %p530_p1 = scmp.lt.s32.totalorder %s424_s1, %s424_s1 }
   0x7   :  { %477 = vmatmul.mubr.msk.bf16.vlgmr.msra.gmra.mrb[0].mxu0 %vm52_vm1, %v651_v4  ;;  %v111_v7 = vsel %vm109_vm2, %v46_v6, 0  ;;  %v260_v34 = vld [vmem:[%s758_s6] sm:$0xff]  ;;  %v265_v39 = vpack.c.bf16 %v263_v38, %v262_v37 }
   0x8   :  { %490 = vmatprep.mubr.msk.bf16.mxu0 %vm574_vm0, %v573_v2  ;;  %481 = vmatpush3.bf16.msra.mxu1 %v111_v7  ;;  %v264_v36 = vpack.c.bf16 %v261_v35, %v260_v34  ;;  %v453_v40 = vld [vmem:[%s757_s5] ss:$0 sm:$0xff] }
   0x9   :  { %494 = vmatprep.subr.bf16.mxu1 %v573_v2  ;;  %487 = vmatpush3.bf16.msra.mxu0 %v161_v15  ;;  %v456_v55 = vld [vmem:[%s759_s7] ss:$0 sm:$0xff] }
   0xa   :  { %488 = vmatprep.subr.bf16.mxu0 %v573_v2  ;;  %v458_v17 = vld [vmem:[%s760_s8] ss:$0 sm:$0xff]  ;;  %s525_s8 = scalar_lea.vmem %s424_s1, 256 }
   0xb   :  { %p526_p0 = scmp.ne.s32.totalorder %s424_s1, %s525_s8  ;;  %p531_p2 = scmp.lt.s32.totalorder %s525_s8, %s525_s8 }
   0xd   :  { %489 = vmatpush3.bf16.msra.mxu0 %v162_v18  ;;  %p532_p3 = por %p531_p2, %p530_p1 }
   0xe   :  { %500 = vmatprep.subr.bf16.mxu0 %v573_v2 }
   0xf   :  { %p533_p4 = pnand %p532_p3, %p526_p0 }
  0xda   :  { %v90_v8 = vpop.f32.mrb[0].mxu0 }
  0xdb   :  { %v478_v9 = vpop.f32.mrb[1].mxu0 }
  0xdc   :  { %v93_v10 = vpop.f32.mrb[2].mxu0 }
  0xdd   :  { %v97_v11 = vpack.c.bf16 %v93_v10, %v90_v8  ;;  %v479_v12 = vpop.f32.mrb[3].mxu0 }
  0xdf   :  { %483 = vmatmul.mubr.msk.bf16.vlgmr.msra.gmra.mrb[0].mxu1 %vm105_vm3, %v97_v11 }
  0xe0   :  { %496 = vmatprep.mubr.msk.bf16.mxu1 %vm574_vm0, %v573_v2 }
 0x1b2   :  { %v147_v20 = vpop.f32.mrb[0].mxu1 }
 0x1b3   :  { %v148_v21 = vadd.f32 %v450_v19, %v147_v20  ;;  %v484_v22 = vpop.f32.mrb[1].mxu1 }
 0x1b4   :  { %v150_v23 = vpop.f32.mrb[2].mxu1 }
 0x1b5   :  { %v151_v24 = vadd.f32 %v450_v19, %v150_v23  ;;  %v485_v25 = vpop.f32.mrb[3].mxu1  ;;  %v154_v26 = vmax.f32 %v148_v21, 0.0  ;;  %v459_v19 = vld [vmem:[%s761_s9] ss:$0 sm:$0xff] }
 0x1b7   :  { %v155_v27 = vmax.f32 %v151_v24, 0.0 }
 0x1b9   :  { %v156_v28 = vpack.c.bf16 %v155_v27, %v154_v26 }
 0x1bb   :  { %491 = vmatmul.mubr.msk.bf16.vlgmr.msra.gmra.mrb[4].mxu0 %vm163_vm4, %v156_v28 }
 0x1bc   :  { %504 = vmatprep.mubr.msk.bf16.mxu0 %vm574_vm0, %v573_v2  ;;  %501 = vmatpush3.bf16.msra.mxu0 %v264_v36 }
 0x1bd   :  { %502 = vmatprep.subr.bf16.mxu0 %v573_v2 }
 0x1c0   :  { %503 = vmatpush3.bf16.msra.mxu0 %v265_v39 }
 0x28e   :  { %v201_v29 = vpop.f32.mrb[4].mxu0 }
 0x28f   :  { %v492_v30 = vpop.f32.mrb[5].mxu0 }
 0x290   :  { %v204_v31 = vpop.f32.mrb[6].mxu0 }
 0x291   :  { %v208_v32 = vpack.c.bf16 %v204_v31, %v201_v29  ;;  %v493_v33 = vpop.f32.mrb[7].mxu0 }
 0x293   :  { %495 = vmatpush3.bf16.msra.mxu1 %v208_v32 }
 0x294   :  { %508 = vmatprep.subr.bf16.mxu1 %v573_v2 }
 0x296   :  { %497 = vmatmul.mubr.msk.bf16.vlgmr.msra.gmra.mrb[4].mxu1 %vm52_vm1, %v651_v4 }
 0x297   :  { %510 = vmatprep.mubr.msk.bf16.mxu1 %vm574_vm0, %v573_v2 }
 0x369   :  { %v250_v41 = vpop.f32.mrb[4].mxu1 }
 0x36a   :  { %v251_v42 = vadd.f32 %v453_v40, %v250_v41  ;;  %v498_v43 = vpop.f32.mrb[5].mxu1 }
 0x36b   :  { %v253_v44 = vpop.f32.mrb[6].mxu1 }
 0x36c   :  { %v254_v45 = vadd.f32 %v453_v40, %v253_v44  ;;  %v499_v46 = vpop.f32.mrb[7].mxu1  ;;  %v257_v47 = vmax.f32 %v251_v42, 0.0 }
 0x36e   :  { %v258_v48 = vmax.f32 %v254_v45, 0.0 }
 0x370   :  { %v259_v49 = vpack.c.bf16 %v258_v48, %v257_v47 }
 0x372   :  { %505 = vmatmul.mubr.msk.bf16.vlgmr.msra.gmra.mrb[8].mxu0 %vm163_vm4, %v259_v49 }
 0x445   :  { %v303_v50 = vpop.f32.mrb[8].mxu0 }
 0x446   :  { %v506_v51 = vpop.f32.mrb[9].mxu0 }
 0x447   :  { %v306_v52 = vpop.f32.mrb[10].mxu0 }
 0x448   :  { %v310_v53 = vpack.c.bf16 %v306_v52, %v303_v50  ;;  %v507_v54 = vpop.f32.mrb[11].mxu0 }
 0x44a   :  { %509 = vmatpush3.bf16.msra.mxu1 %v310_v53 }
 0x44d   :  { %511 = vmatmul.mubr.msk.bf16.vlgmr.msra.gmra.mrb[8].mxu1 %vm52_vm1, %v651_v4 }
 0x520   :  { %v352_v56 = vpop.f32.mrb[8].mxu1 }
 0x521   :  { %v353_v57 = vadd.f32 %v456_v55, %v352_v56  ;;  %v512_v58 = vpop.f32.mrb[9].mxu1 }
 0x522   :  { %v355_v59 = vpop.f32.mrb[10].mxu1 }
 0x523   :  { %v359_v60 = vsel %vm52_vm1, %v353_v57, 0.0  ;;  %v356_v61 = vadd.f32 %v456_v55, %v355_v59  ;;  %v513_v62 = vpop.f32.mrb[11].mxu1 }
 0x524   :  { %360 = vadd.xlane.f32.xlu0 %v359_v60 }
 0x525   :  { %v362_v63 = vsel %vm52_vm1, %v356_v61, 0.0 }
 0x528   :  { %363 = vadd.xlane.f32.xlu0 %v362_v63 }
 0x5b1   :  { %v361_v0 = vpop.xlane.xlu0 %360 }
 0x5b2   :  { %v366_v1 = vmul.f32 0.0625, %v361_v0 }
 0x5b4   :  { %v368_v2 = vsub.f32 %v353_v57, %v366_v1 }
 0x5b5   :  { %v364_v3 = vpop.xlane.xlu0 %363 }
 0x5b6   :  { %v367_v4 = vmul.f32 0.0625, %v364_v3  ;;  %v370_v5 = vmul.f32 %v368_v2, %v368_v2 }
 0x5b8   :  { %v369_v6 = vsub.f32 %v356_v61, %v367_v4  ;;  %v372_v7 = vsel %vm52_vm1, %v370_v5, 0.0 }
 0x5b9   :  { %373 = vadd.xlane.f32.xlu1 %v372_v7 }
 0x5ba   :  { %v371_v8 = vmul.f32 %v369_v6, %v369_v6 }
 0x5bc   :  { %v375_v9 = vsel %vm52_vm1, %v371_v8, 0.0 }
 0x5bd   :  { %376 = vadd.xlane.f32.xlu1 %v375_v9 }
 0x646   :  { %v374_v10 = vpop.xlane.xlu1 %373 }
 0x647   :  { %v378_v11 = vmul.f32 0.0625, %v374_v10 }
 0x649   :  { %v380_v12 = vadd.f32 1e-05, %v378_v11 }
 0x64a   :  { %v377_v13 = vpop.xlane.xlu1 %376 }
 0x64b   :  { %521 = vrsqrt.f32 %v380_v12  ;;  %v379_v14 = vmul.f32 0.0625, %v377_v13 }
 0x64d   :  { %v381_v15 = vadd.f32 1e-05, %v379_v14 }
 0x64f   :  { %523 = vrsqrt.f32 %v381_v15 }
 0x655   :  { %v522_v16 = vpop.eup %521 }
 0x656   :  { %v384_v18 = vmul.f32 %v522_v16, %v368_v2 }
 0x658   :  { %v393_v20 = vmul.f32 %v458_v17, %v384_v18 }
 0x659   :  { %v524_v21 = vpop.eup %523 }
 0x65a   :  { %v385_v22 = vmul.f32 %v524_v21, %v369_v6  ;;  %v402_v23 = vadd.f32 %v459_v19, %v393_v20 }
 0x65c   :  { %v394_v24 = vmul.f32 %v458_v17, %v385_v22  ;;  %404 = vst.msk [vmem:[#allocation2] sm:$0xff] %vm52_vm1, %v402_v23  ;;  %v406_v26 = vsel %vm52_vm1, %v402_v23, 0.0 }
 0x65e   :  { %v403_v25 = vadd.f32 %v459_v19, %v394_v24 }
 0x660   :  { %405 = vst.msk [vmem:[#allocation2 + $0x8] sm:$0xff] %vm52_vm1, %v403_v25  ;;  %v407_v27 = vsel %vm52_vm1, %v403_v25, 0.0 }
 0x661   :  { %536 = shalt.err (!%p533_p4)
}
 0x662   :  { %s537_s2 = scalar_lea.hbm %s762_s10, 256 }
 0x663   :  { %p538_p5 = scmp.ne.s32.totalorder %s762_s10, %s537_s2  ;;  %p541_p6 = scmp.lt.u32.totalorder %s537_s2, %s762_s10 }
 0x665   :  { %p543_p7 = pnand %p541_p6, %p538_p5 }
 0x667   :  { %546 = shalt.err (!%p543_p7)
}
 0x668   :  { %s576_s29 = smov 128   ;;  %s577_s30 = smov 8   ;;  %v408_v28 = vadd.f32 %v407_v27, %v406_v26  ;;  %vm416_vm5 = vcmask 122880  }
 0x669   :  { %429 = dma.vmem_to_hbm [thread:$0]  %s424_s1, 256, %s762_s10, [#allocation3], %s576_s29, %s576_s29, %s577_s30  }
 0x66a   :  { %v409_v29 = vrot.slane %v408_v28, 4  ;;  %s578_s4 = smov [#allocation4]  }
 0x66b   :  { %s436_s13 = sshll.u32 %s578_s4, 4  ;;  %s437_s13 = int_to_ptr.vmem [resolvable:$true] %s436_s13 }
 0x66c   :  { %v410_v30 = vadd.f32 %v409_v29, %v408_v28  ;;  %s547_s14 = scalar_lea.vmem %s437_s13, 16  ;;  %s551_s15 = scalar_lea.vmem %s437_s13, 32 }
 0x66d   :  { %p548_p8 = scmp.ne.s32.totalorder %s437_s13, %s547_s14  ;;  %p552_p9 = scmp.lt.s32.totalorder %s437_s13, %s437_s13 }
 0x66e   :  { %v411_v31 = vrot.slane %v410_v30, 2  ;;  %p553_p10 = scmp.lt.s32.totalorder %s551_s15, %s547_s14 }
 0x670   :  { %v412_v32 = vadd.f32 %v411_v31, %v410_v30  ;;  %p554_p11 = por %p553_p10, %p552_p9 }
 0x672   :  { %v413_v33 = vrot.slane %v412_v32, 1  ;;  %p555_p12 = pnand %p554_p11, %p548_p8 }
 0x674   :  { %v414_v34 = vadd.f32 %v413_v33, %v412_v32 }
 0x676   :  { %v415_v35 = vmul.f32 0.0625, %v414_v34 }
 0x678   :  { %417 = vst.msk [vmem:[#allocation4] sm:$0x1] %vm416_vm5, %v415_v35 }
 0x679   :  { %558 = shalt.err (!%p555_p12)
}
 0x67a   :  { %s559_s17 = scalar_lea.hbm %s763_s11, 16 }
 0x67b   :  { %p560_p13 = scmp.ne.s32.totalorder %s763_s11, %s559_s17  ;;  %p563_p0 = scmp.lt.u32.totalorder %s559_s17, %s763_s11 }
 0x67d   :  { %p565_p1 = pnand %p563_p0, %p560_p13 }
 0x67f   :  { %568 = shalt.err (!%p565_p1)
}
 0x680   :  { %439 = dma.vmem_to_hbm [thread:$0]  %s437_s13, 16, %s763_s11, [#allocation5]  }
 0x681   :  { %569 = dma.done.wait [#allocation3], 256  }
 0x682   :  { %570 = vsyncadd [#allocation3], 4294967040 }
 0x683   :  { %571 = dma.done.wait [#allocation5], 16  }
 0x684   :  { %572 = vsyncadd [#allocation5], 4294967280 }
 0x685   :  { %446 = vsyncpa [#allocation3], 1 }
 0x686   :  { %447 = vsyncpa [#allocation5], 1 }

</bundles_post_ra>
